<compile_context>
chip_gen: v6e
topology: v6e:2x2x1
jax: 0.10.0
libtpu: 0.0.40
codegen_flags: <defaults>
</compile_context>

<pallas_src>
import functools

import jax
import jax.numpy as jnp
from jax.experimental import pallas as pl
from jax.experimental.pallas import tpu as pltpu


def _round_up(x: int, m: int) -> int:
    return ((x + m - 1) // m) * m


def _label_attention_kernel(xf_ref, w1_ref, lvt_ref, w3t_ref, out_ref, wgt_ref,
                            *, seq_len: int, seq_pad: int):
    # xf_ref : [BT*Tp, Dp]  bf16  batch-tile of flattened (zero-padded) tokens
    # w1_ref : [Dp, Pp]     bf16  first_linear weight (pre-transposed, padded)
    # lvt_ref: [Pp, TC]     bf16  fused label vectors (pre-transposed), current class tile
    # w3t_ref: [Dp, TC]     bf16  fused third_linear weights (pre-transposed), class tile
    # out_ref: [BT, TC]     f32   logits (bias added outside the kernel)
    # wgt_ref: [BT*Tp, Pp]  bf16  scratch: tanh(x @ W1), cached across class tiles
    ci = pl.program_id(1)

    @pl.when(ci == 0)
    def _():
        w = jnp.dot(xf_ref[...], w1_ref[...], preferred_element_type=jnp.float32)
        wgt_ref[...] = jnp.tanh(w).astype(wgt_ref.dtype)

    bt = out_ref.shape[0]
    tc = lvt_ref.shape[1]
    tp = xf_ref.shape[0] // bt

    # Attention scores for this class tile: [BT*Tp, TC], f32 accumulation on the MXU.
    scores = jnp.dot(wgt_ref[...], lvt_ref[...], preferred_element_type=jnp.float32)
    # Per-token class contributions x @ W3^T: [BT*Tp, TC] (independent of the softmax).
    xw3 = jnp.dot(xf_ref[...], w3t_ref[...], preferred_element_type=jnp.float32)

    # Split the token axis back into (batch, seq); last dim unchanged and Tp is a
    # multiple of 8, so this stays sublane-aligned (no relayout).
    scores = scores.reshape(bt, tp, tc)
    xw3 = xw3.reshape(bt, tp, tc)

    if seq_pad > seq_len:
        # Mask padded sequence positions so they vanish from the softmax of real rows.
        t_idx = jax.lax.broadcasted_iota(jnp.int32, (bt, tp, tc), 1)
        scores = jnp.where(t_idx < seq_len, scores, jnp.float32(-1e30))

    # Softmax over the sequence axis (torch dim=1), fused with the weighted sum:
    #   logits[b, c] = (sum_t e[b,t,c] * xw3[b,t,c]) / (sum_t e[b,t,c])
    m = jnp.max(scores, axis=1, keepdims=True)
    e = jnp.exp(scores - m)
    num = jnp.sum(e * xw3, axis=1)                    # [BT, TC]
    den = jnp.sum(e, axis=1)                          # [BT, TC]
    out_ref[...] = (num * pl.reciprocal(den, approx=True)).astype(out_ref.dtype)


@functools.partial(jax.jit, static_argnames=("batch_tile", "class_tile"))
def label_attention(x, w1, lv9, lv10, w39, b9, w310, b10,
                    *, batch_tile: int = 8, class_tile: int = 256):
    B, T, D = x.shape
    P = w1.shape[1]
    C9, C10 = lv9.shape[0], lv10.shape[0]
    Ctot = C9 + C10

    # Padded problem dims: lane-align D/P/classes, sublane-align T.
    Dp = _round_up(D, 128)
    Pp = _round_up(P, 128)
    Tp = _round_up(T, 8)
    TC = min(_round_up(class_tile, 128), _round_up(Ctot, 128))  # lane-aligned class tile
    Cp = _round_up(Ctot, TC)

    # Batch tile (sublane-aligned).  Prefer >=2 batch tiles when the batch allows it so
    # the "parallel" axis can be split across v7x's two TensorCores.
    B8 = _round_up(B, 8)
    BT = max(8, min(_round_up(batch_tile, 8), B8))
    if B8 // BT < 2 and B8 >= 16:
        BT = max(8, (B8 // 2) // 8 * 8)

    # Derive the VMEM footprint of one grid step and auto-shrink BT until it fits.
    def vmem_estimate(bt):
        blk_x = bt * Tp * Dp * 2
        blk_w1 = Dp * Pp * 2
        blk_lvt = Pp * TC * 2
        blk_w3t = Dp * TC * 2
        blk_out = bt * TC * 4
        scratch = bt * Tp * Pp * 2                    # cached tanh(x@W1), bf16
        interm = 4 * bt * Tp * TC * 4 + bt * Tp * Pp * 4  # live f32 temporaries
        return 2 * (blk_x + blk_w1 + blk_lvt + blk_w3t + blk_out) + scratch + interm

    try:
        vmem_cap = int(pltpu.get_tpu_info().vmem_capacity_bytes)
    except Exception:
        vmem_cap = 128 * 1024 * 1024                  # conservative default (v5e/v6e)
    budget = int(vmem_cap * 0.6)
    while BT > 8 and vmem_estimate(BT) > budget:
        BT = max(8, (BT // 2) // 8 * 8)
    vmem_limit = min(int(vmem_cap * 0.75),
                     max(3 * vmem_estimate(BT) // 2, 32 * 1024 * 1024))

    Bp = _round_up(B, BT)

    cast = lambda a: a.astype(jnp.bfloat16)

    # Pad the batch/seq/feature axes and flatten tokens so every matmul has a tall,
    # lane-dense M x K shape.  All padding is with zeros (exact for the matmuls; padded
    # tokens are masked inside the kernel, padded batch rows are sliced away below).
    xp = jnp.pad(x, ((0, Bp - B), (0, Tp - T), (0, Dp - D)))
    xf = cast(xp.reshape(Bp * Tp, Dp))

    w1p = jnp.pad(cast(w1), ((0, Dp - D), (0, Pp - P)))

    # Fuse the two heads, cast to bf16 first, then pad (no f32 scatters / transients).
    lvt = jnp.pad(cast(jnp.concatenate([lv9, lv10], axis=0)).T,
                  ((0, Pp - P), (0, Cp - Ctot)))      # [Pp, Cp]
    w3t = jnp.pad(cast(jnp.concatenate([w39, w310], axis=0)).T,
                  ((0, Dp - D), (0, Cp - Ctot)))      # [Dp, Cp]

    kernel = functools.partial(_label_attention_kernel, seq_len=T, seq_pad=Tp)

    out = pl.pallas_call(
        kernel,
        out_shape=jax.ShapeDtypeStruct((Bp, Cp), jnp.float32),
        grid_spec=pltpu.PrefetchScalarGridSpec(
            num_scalar_prefetch=0,
            grid=(Bp // BT, Cp // TC),                 # (batch tiles, class tiles)
            in_specs=[
                pl.BlockSpec((BT * Tp, Dp), lambda bi, ci: (bi, 0)),   # tokens
                pl.BlockSpec((Dp, Pp), lambda bi, ci: (0, 0)),         # W1 (constant)
                pl.BlockSpec((Pp, TC), lambda bi, ci: (0, ci)),        # label vectors
                pl.BlockSpec((Dp, TC), lambda bi, ci: (0, ci)),        # W3^T
            ],
            out_specs=pl.BlockSpec((BT, TC), lambda bi, ci: (bi, ci)),
            scratch_shapes=[pltpu.VMEM((BT * Tp, Pp), jnp.bfloat16)],  # cached tanh(x@W1)
        ),
        compiler_params=pltpu.CompilerParams(
            dimension_semantics=("parallel", "arbitrary"),
            vmem_limit_bytes=int(vmem_limit),
        ),
    )(xf, w1p, lvt, w3t)

    # Bias add + head split outside the kernel (keeps lane-sparse biases out of VMEM).
    logits9 = out[:B, :C9] + b9
    logits10 = out[:B, C9:Ctot] + b10
    return logits9, logits10


def reference_f32(x, w1, lv9, lv10, w39, b9, w310, b10):
    """Pure-f32 reference of the PyTorch module's forward."""
    weights = jnp.tanh(jnp.einsum("btd,dp->btp", x, w1))

    def head(lv, w3, b):
        att = jnp.einsum("btp,cp->btc", weights, lv)
        att = jax.nn.softmax(att, axis=1)                 # softmax over seq dim
        weighted = jnp.einsum("btc,btd->bcd", att, x)     # [B, C, D]
        return jnp.sum(w3[None] * weighted, axis=2) + b

    return head(lv9, w39, b9), head(lv10, w310, b10)


def reference_mixed(x, w1, lv9, lv10, w39, b9, w310, b10):
    """Reference mirroring the kernel's precision policy (bf16 inputs, f32 accumulation)."""
    f32 = lambda a: a.astype(jnp.bfloat16).astype(jnp.float32)
    xb, w1b = f32(x), f32(w1)
    weights = f32(jnp.tanh(jnp.einsum("btd,dp->btp", xb, w1b)))  # stored bf16 in-kernel

    def head(lv, w3, b):
        scores = jnp.einsum("btp,cp->btc", weights, f32(lv))
        att = jax.nn.softmax(scores, axis=1)
        xw3 = jnp.einsum("btd,cd->btc", xb, f32(w3))
        return jnp.sum(att * xw3, axis=1) + b

    return head(lv9, w39, b9), head(lv10, w310, b10)


if __name__ == "__main__":
    # Small shapes consistent with the module's forward signature.
    B, T = 2, 16          # batch, seq_len
    D = 32                # input_size
    P = 32                # projection_size
    C9, C10 = 16, 32      # num_classes_icd9, num_classes_icd10

    key = jax.random.PRNGKey(0)
    kx, k1, k2, k3, k4, k5, k6, k7 = jax.random.split(key, 8)

    x = jax.random.normal(kx, (B, T, D), dtype=jnp.float32)

    std = 0.03
    w1 = std * jax.random.normal(k1, (D, P), dtype=jnp.float32)       # first_linear.weight.T
    lv9 = std * jax.random.normal(k2, (C9, P), dtype=jnp.float32)     # GraphAttentionLayer('mimiciv_icd9')
    lv10 = std * jax.random.normal(k3, (C10, P), dtype=jnp.float32)   # GraphAttentionLayer('mimiciv_icd10')
    w39 = std * jax.random.normal(k4, (C9, D), dtype=jnp.float32)     # third_linear_icd9.weight
    b9 = 0.01 * jax.random.normal(k5, (1, C9), dtype=jnp.float32)     # third_linear_icd9.bias
    w310 = std * jax.random.normal(k6, (C10, D), dtype=jnp.float32)   # third_linear_icd10.weight
    b10 = 0.01 * jax.random.normal(k7, (1, C10), dtype=jnp.float32)   # third_linear_icd10.bias

    logits9, logits10 = label_attention(x, w1, lv9, lv10, w39, b9, w310, b10)
    jax.block_until_ready((logits9, logits10))

    assert logits9.shape == (B, C9) and logits10.shape == (B, C10)

    # Check against a reference that mirrors the kernel's mixed-precision policy
    # (tolerance includes the approximate EUP reciprocal used for the softmax denom).
    m9, m10 = reference_mixed(x, w1, lv9, lv10, w39, b9, w310, b10)
    assert jnp.allclose(logits9, m9, atol=5e-4, rtol=5e-3), float(jnp.max(jnp.abs(logits9 - m9)))
    assert jnp.allclose(logits10, m10, atol=5e-4, rtol=5e-3), float(jnp.max(jnp.abs(logits10 - m10)))

    # Looser check against the pure-f32 LAAT reference (bounds the bf16-input error).
    f9, f10 = reference_f32(x, w1, lv9, lv10, w39, b9, w310, b10)
    assert jnp.allclose(logits9, f9, atol=3e-3, rtol=5e-2)
    assert jnp.allclose(logits10, f10, atol=3e-3, rtol=5e-2)

    print("KERNEL_OK")
</pallas_src>

<mosaic_0001>
module attributes {stable_mosaic.version = 11 : i64} {
  func.func @_label_attention_kernel(%arg0: i32, %arg1: i32, %arg2: memref<128x128xbf16, #tpu.memory_space<vmem>>, %arg3: memref<128x128xbf16, #tpu.memory_space<vmem>>, %arg4: memref<128x128xbf16, #tpu.memory_space<vmem>>, %arg5: memref<128x128xbf16, #tpu.memory_space<vmem>>, %arg6: memref<8x128xf32, #tpu.memory_space<vmem>>, %arg7: memref<128x128xbf16, #tpu.memory_space<vmem>>) attributes {dimension_semantics = [#tpu.dimension_semantics<parallel>, #tpu.dimension_semantics<arbitrary>], iteration_bounds = array<i64: 1, 1>, scalar_prefetch = 0 : i64, scratch_operands = 1 : i64, tpu.core_type = #tpu.core_type<tc>, window_params = [{transform_indices = @transform_0, window_bounds = array<i64: 128, 128>}, {pipeline_mode = #tpu.pipeline_mode<synchronous>, transform_indices = @transform_1, window_bounds = array<i64: 128, 128>}, {transform_indices = @transform_2, window_bounds = array<i64: 128, 128>}, {transform_indices = @transform_3, window_bounds = array<i64: 128, 128>}, {transform_indices = @transform_4, window_bounds = array<i64: 8, 128>}]} {
    %c0_i32 = arith.constant 0 : i32
    %0 = arith.cmpi eq, %arg1, %c0_i32 : i32
    %1 = arith.extui %0 : i1 to i32
    %c0_i32_0 = arith.constant 0 : i32
    %2 = arith.cmpi ne, %1, %c0_i32_0 : i32
    scf.if %2 {
      %c0_14 = arith.constant 0 : index
      %c0_15 = arith.constant 0 : index
      %22 = vector.load %arg2[%c0_14, %c0_15] : memref<128x128xbf16, #tpu.memory_space<vmem>>, vector<128x128xbf16>
      %c0_16 = arith.constant 0 : index
      %c0_17 = arith.constant 0 : index
      %23 = vector.load %arg3[%c0_16, %c0_17] : memref<128x128xbf16, #tpu.memory_space<vmem>>, vector<128x128xbf16>
      %cst_18 = arith.constant dense<0.000000e+00> : vector<128x128xf32>
      %24 = tpu.matmul %22, %23, %cst_18 {dimension_numbers = #tpu.dot_dimension_numbers<[1], [0], [0], [1], [0, 0, 1, 1], [], []>} : vector<128x128xbf16>, vector<128x128xbf16>, vector<128x128xf32> -> vector<128x128xf32>
      %25 = math.tanh %24 : vector<128x128xf32>
      %26 = arith.truncf %25 : vector<128x128xf32> to vector<128x128xbf16>
      %c0_19 = arith.constant 0 : index
      %c0_20 = arith.constant 0 : index
      %27 = vector.load %arg7[%c0_19, %c0_20] : memref<128x128xbf16, #tpu.memory_space<vmem>>, vector<128x128xbf16>
      tpu.vector_store %arg7[%c0_19, %c0_20], %26 {strides = array<i32>} : memref<128x128xbf16, #tpu.memory_space<vmem>>, vector<128x128xbf16>,
    } else {
    }
    %c0 = arith.constant 0 : index
    %c0_1 = arith.constant 0 : index
    %3 = vector.load %arg7[%c0, %c0_1] : memref<128x128xbf16, #tpu.memory_space<vmem>>, vector<128x128xbf16>
    %c0_2 = arith.constant 0 : index
    %c0_3 = arith.constant 0 : index
    %4 = vector.load %arg4[%c0_2, %c0_3] : memref<128x128xbf16, #tpu.memory_space<vmem>>, vector<128x128xbf16>
    %cst = arith.constant dense<0.000000e+00> : vector<128x128xf32>
    %5 = tpu.matmul %3, %4, %cst {dimension_numbers = #tpu.dot_dimension_numbers<[1], [0], [0], [1], [0, 0, 1, 1], [], []>} : vector<128x128xbf16>, vector<128x128xbf16>, vector<128x128xf32> -> vector<128x128xf32>
    %c0_4 = arith.constant 0 : index
    %c0_5 = arith.constant 0 : index
    %6 = vector.load %arg2[%c0_4, %c0_5] : memref<128x128xbf16, #tpu.memory_space<vmem>>, vector<128x128xbf16>
    %c0_6 = arith.constant 0 : index
    %c0_7 = arith.constant 0 : index
    %7 = vector.load %arg5[%c0_6, %c0_7] : memref<128x128xbf16, #tpu.memory_space<vmem>>, vector<128x128xbf16>
    %cst_8 = arith.constant dense<0.000000e+00> : vector<128x128xf32>
    %8 = tpu.matmul %6, %7, %cst_8 {dimension_numbers = #tpu.dot_dimension_numbers<[1], [0], [0], [1], [0, 0, 1, 1], [], []>} : vector<128x128xbf16>, vector<128x128xbf16>, vector<128x128xf32> -> vector<128x128xf32>
    %9 = vector.shape_cast %5 : vector<128x128xf32> to vector<8x16x128xf32>
    %10 = vector.shape_cast %8 : vector<128x128xf32> to vector<8x16x128xf32>
    %cst_9 = arith.constant dense<0xFF800000> : vector<8x128xf32>
    %11 = vector.multi_reduction <maximumf>, %9, %cst_9 [1] : vector<8x16x128xf32> to vector<8x128xf32>
    %12 = vector.shape_cast %11 : vector<8x128xf32> to vector<8x1x128xf32>
    %13 = vector.broadcast %12 : vector<8x1x128xf32> to vector<8x16x128xf32>
    %14 = arith.subf %9, %13 : vector<8x16x128xf32>
    %15 = math.exp %14 : vector<8x16x128xf32>
    %16 = arith.mulf %15, %10 : vector<8x16x128xf32>
    %cst_10 = arith.constant dense<0.000000e+00> : vector<8x128xf32>
    %17 = vector.multi_reduction <add>, %16, %cst_10 [1] : vector<8x16x128xf32> to vector<8x128xf32>
    %cst_11 = arith.constant dense<0.000000e+00> : vector<8x128xf32>
    %18 = vector.multi_reduction <add>, %15, %cst_11 [1] : vector<8x16x128xf32> to vector<8x128xf32>
    %19 = tpu.reciprocal %18 {approx = true} : vector<8x128xf32> -> vector<8x128xf32>
    %20 = arith.mulf %17, %19 : vector<8x128xf32>
    %c0_12 = arith.constant 0 : index
    %c0_13 = arith.constant 0 : index
    %21 = vector.load %arg6[%c0_12, %c0_13] : memref<8x128xf32, #tpu.memory_space<vmem>>, vector<8x128xf32>
    tpu.vector_store %arg6[%c0_12, %c0_13], %20 {strides = array<i32>} : memref<8x128xf32, #tpu.memory_space<vmem>>, vector<8x128xf32>,
    return
  }
  func.func @transform_0(%arg0: i32, %arg1: i32) -> (i32, i32) {
    %c0_i32 = arith.constant 0 : i32
    %c0_i32_0 = arith.constant 0 : i32
    return %arg0, %c0_i32 : i32, i32
  }
  func.func @transform_1(%arg0: i32, %arg1: i32) -> (i32, i32) {
    %c0_i32 = arith.constant 0 : i32
    %c0_i32_0 = arith.constant 0 : i32
    %c0_i32_1 = arith.constant 0 : i32
    return %c0_i32, %c0_i32_0 : i32, i32
  }
  func.func @transform_2(%arg0: i32, %arg1: i32) -> (i32, i32) {
    %c0_i32 = arith.constant 0 : i32
    %c0_i32_0 = arith.constant 0 : i32
    return %c0_i32, %arg1 : i32, i32
  }
  func.func @transform_3(%arg0: i32, %arg1: i32) -> (i32, i32) {
    %c0_i32 = arith.constant 0 : i32
    %c0_i32_0 = arith.constant 0 : i32
    return %c0_i32, %arg1 : i32, i32
  }
  func.func @transform_4(%arg0: i32, %arg1: i32) -> (i32, i32) {
    %c0_i32 = arith.constant 0 : i32
    return %arg0, %arg1 : i32, i32
  }
}

</mosaic_0001>

<bundles_post_ra>
// kernel: label_attention.1
= control target key start
LH: loop header
LB: loop body
LE: loop exit
PB: predicated region body
PF: predicated region fallthrough
CT: control target
= control target key end

     0   :  { %vm1049_vm0 = vcmask 1041409   ;;  %vm1051_vm1 = vcmask 1042434   ;;  %vm1053_vm2 = vcmask 1043459   ;;  %vm1055_vm3 = vcmask 1044484   ;;  %s1735_s1 = inlined_call_operand.vmem [shape: bf16[128,128], index: 1, kind: input, shape index: {}]   ;;  %s1736_s0 = inlined_call_operand.vmem [shape: bf16[128,128], index: 0, kind: input, shape index: {}]   ;;  %s1737_s2 = inlined_call_operand.vmem [shape: bf16[128,128], index: 2, kind: input, shape index: {}]   ;;  %s1738_s3 = inlined_call_operand.vmem [shape: bf16[128,128], index: 3, kind: input, shape index: {}]   ;;  %s1739_s4 = inlined_call_operand.vmem [shape: f32[8,128], index: 4, kind: output, shape index: {}]  }
   0x1   :  { %v1356_v0 = vld [vmem:[%s1735_s1 + $0x38] sm:$0xff]   ;;  %v1357_v1 = vld [vmem:[%s1735_s1 + $0x30] sm:$0xff]   ;;  %v1358_v2 = vld [vmem:[%s1735_s1 + $0x28] sm:$0xff]   ;;  %vm1057_vm4 = vcmask 1045509   ;;  %vm1059_vm5 = vcmask 1046534   ;;  %vm1061_vm6 = vcmask 1047559  }
   0x2   :  { %1244 = vmatprep.subr.bf16.mxu0 %v1356_v0  ;;  %v1359_v3 = vld [vmem:[%s1735_s1 + $0x20] sm:$0xff]   ;;  %v1360_v5 = vld [vmem:[%s1735_s1 + $0x18] sm:$0xff]   ;;  %v1361_v6 = vld [vmem:[%s1735_s1 + $0x10] sm:$0xff]  }
   0x3   :  { %1245 = vmatpush3.bf16.msra.mxu0 %v1356_v0  ;;  %v1364_v4 = vld [vmem:[%s1736_s0] sm:$0xff]   ;;  %v1362_v7 = vld [vmem:[%s1735_s1 + $0x8] sm:$0xff]   ;;  %v1366_v10 = vld [vmem:[%s1736_s0 + $0x10] sm:$0xff]  }
   0x4   :  { %1246 = vmatprep.subr.bf16.mxu0 %v1357_v1  ;;  %1260 = vmatprep.mubr.bf16.mxu0 %v1364_v4  ;;  %v1363_v8 = vld [vmem:[%s1735_s1] sm:$0xff]   ;;  %v1365_v9 = vld [vmem:[%s1736_s0 + $0x8] sm:$0xff]   ;;  %v1367_v11 = vld [vmem:[%s1736_s0 + $0x18] sm:$0xff]  }
   0x5   :  { %v1368_v12 = vld [vmem:[%s1736_s0 + $0x20] sm:$0xff]   ;;  %v1369_v13 = vld [vmem:[%s1736_s0 + $0x28] sm:$0xff]   ;;  %v1370_v14 = vld [vmem:[%s1736_s0 + $0x30] sm:$0xff]  }
   0x6   :  { %v1371_v15 = vld [vmem:[%s1736_s0 + $0x38] sm:$0xff]   ;;  %v1373_v17 = vld [vmem:[%s1737_s2 + $0x30] sm:$0xff]   ;;  %v1374_v18 = vld [vmem:[%s1737_s2 + $0x28] sm:$0xff]  }
   0x7   :  { %1247 = vmatpush3.bf16.msra.mxu0 %v1357_v1  ;;  %v1372_v16 = vld [vmem:[%s1737_s2 + $0x38] sm:$0xff]   ;;  %v1375_v19 = vld [vmem:[%s1737_s2 + $0x20] sm:$0xff]   ;;  %v1377_v21 = vld [vmem:[%s1737_s2 + $0x10] sm:$0xff]  }
   0x8   :  { %1248 = vmatprep.subr.bf16.mxu0 %v1358_v2  ;;  %1276 = vmatprep.subr.bf16.mxu1 %v1372_v16  ;;  %v1376_v20 = vld [vmem:[%s1737_s2 + $0x18] sm:$0xff]   ;;  %v1378_v22 = vld [vmem:[%s1737_s2 + $0x8] sm:$0xff]   ;;  %v1379_v23 = vld [vmem:[%s1737_s2] sm:$0xff]  }
   0x9   :  { %1277 = vmatpush3.bf16.msra.mxu1 %v1372_v16  ;;  %v1584_v24 = vld [vmem:[%s1738_s3 + $0x38] sm:$0xff]   ;;  %v1592_v25 = vld [vmem:[%s1738_s3 + $0x30] sm:$0xff]   ;;  %v1599_v26 = vld [vmem:[%s1738_s3 + $0x28] sm:$0xff]  }
   0xa   :  { %1278 = vmatprep.subr.bf16.mxu1 %v1373_v17  ;;  %v1606_v27 = vld [vmem:[%s1738_s3 + $0x20] sm:$0xff]   ;;  %v1613_v28 = vld [vmem:[%s1738_s3 + $0x18] sm:$0xff]   ;;  %v1619_v29 = vld [vmem:[%s1738_s3 + $0x10] sm:$0xff]  }
   0xb   :  { %1249 = vmatpush3.bf16.msra.mxu0 %v1358_v2  ;;  %v1627_v30 = vld [vmem:[%s1738_s3 + $0x8] sm:$0xff]   ;;  %v1633_v31 = vld [vmem:[%s1738_s3] sm:$0xff]   ;;  %v1398_v34 = vld [vmem:[%s1736_s0 + $0x10] sm:$0xff]  }
   0xc   :  { %1250 = vmatprep.subr.bf16.mxu0 %v1359_v3  ;;  %v1396_v32 = vld [vmem:[%s1736_s0] sm:$0xff]   ;;  %v1397_v33 = vld [vmem:[%s1736_s0 + $0x8] sm:$0xff]   ;;  %v1399_v35 = vld [vmem:[%s1736_s0 + $0x18] sm:$0xff]  }
   0xd   :  { %1279 = vmatpush3.bf16.msra.mxu1 %v1373_v17 }
   0xe   :  { %1280 = vmatprep.subr.bf16.mxu1 %v1374_v18 }
   0xf   :  { %1251 = vmatpush3.bf16.msra.mxu0 %v1359_v3 }
  0x10   :  { %1252 = vmatprep.subr.bf16.mxu0 %v1360_v5 }
  0x11   :  { %1281 = vmatpush3.bf16.msra.mxu1 %v1374_v18  ;;  %v1400_v18 = vld [vmem:[%s1736_s0 + $0x20] sm:$0xff]  }
  0x12   :  { %1282 = vmatprep.subr.bf16.mxu1 %v1375_v19 }
  0x13   :  { %1253 = vmatpush3.bf16.msra.mxu0 %v1360_v5 }
  0x14   :  { %1254 = vmatprep.subr.bf16.mxu0 %v1361_v6 }
  0x15   :  { %1283 = vmatpush3.bf16.msra.mxu1 %v1375_v19 }
  0x16   :  { %1284 = vmatprep.subr.bf16.mxu1 %v1376_v20 }
  0x17   :  { %1255 = vmatpush3.bf16.msra.mxu0 %v1361_v6 }
  0x18   :  { %1256 = vmatprep.subr.bf16.mxu0 %v1362_v7 }
  0x19   :  { %1285 = vmatpush3.bf16.msra.mxu1 %v1376_v20 }
  0x1a   :  { %1286 = vmatprep.subr.bf16.mxu1 %v1377_v21 }
  0x1b   :  { %1257 = vmatpush3.bf16.msra.mxu0 %v1362_v7 }
  0x1c   :  { %1258 = vmatprep.subr.bf16.mxu0 %v1363_v8 }
  0x1d   :  { %1287 = vmatpush3.bf16.msra.mxu1 %v1377_v21  ;;  %v1401_v21 = vld [vmem:[%s1736_s0 + $0x28] sm:$0xff]  }
  0x1e   :  { %1288 = vmatprep.subr.bf16.mxu1 %v1378_v22 }
  0x1f   :  { %1259 = vmatpush3.bf16.msra.mxu0 %v1363_v8 }
  0x20   :  { %1308 = vmatprep.subr.bf16.mxu0 %v1584_v24 }
  0x21   :  { %1289 = vmatpush3.bf16.msra.mxu1 %v1378_v22  ;;  %v1402_v22 = vld [vmem:[%s1736_s0 + $0x30] sm:$0xff]  }
  0x22   :  { %1261 = vmatmul.mubr.bf16.vlgmr.msra.gmra.mxu0 %v1365_v9  ;;  %1290 = vmatprep.subr.bf16.mxu1 %v1379_v23 }
  0x23   :  { %1264 = vmatprep.mubr.bf16.mxu0 %v1366_v10  ;;  %1309 = vmatpush3.bf16.msra.mxu0 %v1584_v24 }
  0x24   :  { %1310 = vmatprep.subr.bf16.mxu0 %v1592_v25 }
  0x25   :  { %1291 = vmatpush3.bf16.msra.mxu1 %v1379_v23  ;;  %v1403_v23 = vld [vmem:[%s1736_s0 + $0x38] sm:$0xff]  }
  0x26   :  { %1340 = vmatprep.subr.bf16.mxu1 %v1584_v24 }
  0x27   :  { %1311 = vmatpush3.bf16.msra.mxu0 %v1592_v25 }
  0x28   :  { %1312 = vmatprep.subr.bf16.mxu0 %v1599_v26 }
  0x2a   :  { %1265 = vmatmul.mubr.bf16.gmra.mxu0 %v1367_v11 }
  0x2b   :  { %1268 = vmatprep.mubr.bf16.mxu0 %v1368_v12  ;;  %1313 = vmatpush3.bf16.msra.mxu0 %v1599_v26 }
  0x2c   :  { %1314 = vmatprep.subr.bf16.mxu0 %v1606_v27 }
  0x2f   :  { %1315 = vmatpush3.bf16.msra.mxu0 %v1606_v27 }
  0x30   :  { %1316 = vmatprep.subr.bf16.mxu0 %v1613_v28 }
  0x32   :  { %1269 = vmatmul.mubr.bf16.gmra.mxu0 %v1369_v13 }
  0x33   :  { %1272 = vmatprep.mubr.bf16.mxu0 %v1370_v14  ;;  %1317 = vmatpush3.bf16.msra.mxu0 %v1613_v28 }
  0x34   :  { %1318 = vmatprep.subr.bf16.mxu0 %v1619_v29 }
  0x37   :  { %1319 = vmatpush3.bf16.msra.mxu0 %v1619_v29 }
  0x38   :  { %1320 = vmatprep.subr.bf16.mxu0 %v1627_v30 }
  0x3a   :  { %1273 = vmatmul.mubr.bf16.gmra.mxu0 %v1371_v15 }
  0x3b   :  { %1321 = vmatpush3.bf16.msra.mxu0 %v1627_v30  ;;  %1324 = vmatprep.mubr.bf16.mxu0 %v1396_v32 }
  0x3c   :  { %1322 = vmatprep.subr.bf16.mxu0 %v1633_v31 }
  0x3f   :  { %1323 = vmatpush3.bf16.msra.mxu0 %v1633_v31 }
  0x42   :  { %1325 = vmatmul.mubr.bf16.vlgmr.msra.gmra.mxu0 %v1397_v33 }
  0x43   :  { %1328 = vmatprep.mubr.bf16.mxu0 %v1398_v34 }
  0x4a   :  { %1329 = vmatmul.mubr.bf16.gmra.mxu0 %v1399_v35 }
  0xe2   :  { %v1262_v36 = vpop.f32.mrf.mxu0 }
  0xe3   :  { %1404 = vtanh.f32 %v1262_v36 }
  0xe4   :  { %v184_v37 = vpop.f32.mrf.mxu0 }
  0xe6   :  { %v1263_v38 = vpop.f32.mrf.mxu0 }
  0xe7   :  { %1406 = vtanh.f32 %v1263_v38 }
  0xe8   :  { %1408 = vtanh.f32 %v184_v37  ;;  %v187_v39 = vpop.f32.mrf.mxu0 }
  0xe9   :  { %1410 = vtanh.f32 %v187_v39 }
  0xea   :  { %v1266_v40 = vpop.f32.mrf.mxu0 }
  0xeb   :  { %1412 = vtanh.f32 %v1266_v40 }
  0xec   :  { %v200_v41 = vpop.f32.mrf.mxu0 }
  0xee   :  { %v1267_v42 = vpop.f32.mrf.mxu0 }
  0xef   :  { %1414 = vtanh.f32 %v1267_v42 }
  0xf0   :  { %1416 = vtanh.f32 %v200_v41  ;;  %v203_v43 = vpop.f32.mrf.mxu0  ;;  %v1405_v45 = vpop.eup %1404 }
  0xf1   :  { %1418 = vtanh.f32 %v203_v43 }
  0xf2   :  { %v1270_v44 = vpop.f32.mrf.mxu0 }
  0xf3   :  { %1420 = vtanh.f32 %v1270_v44 }
  0xf4   :  { %v1407_v46 = vpop.eup %1406  ;;  %v216_v47 = vpop.f32.mrf.mxu0 }
  0xf5   :  { %v1409_v48 = vpop.eup %1408  ;;  %v1157_v49 = vpack.c.bf16 %v1407_v46, %v1405_v45 }
  0xf6   :  { %v1411_v50 = vpop.eup %1410  ;;  %v1271_v51 = vpop.f32.mrf.mxu0 }
  0xf7   :  { %1189 = vst [vmem:[#allocation2 + $0x8] sm:$0xff] %v1157_v49   ;;  %v1152_v52 = vpack.c.bf16 %v1411_v50, %v1409_v48  ;;  %1422 = vtanh.f32 %v1271_v51 }
  0xf8   :  { %1424 = vtanh.f32 %v216_v47  ;;  %v219_v53 = vpop.f32.mrf.mxu0  ;;  %v1413_v55 = vpop.eup %1412 }
  0xf9   :  { %1153 = vst [vmem:[#allocation2] sm:$0xff] %v1152_v52   ;;  %1426 = vtanh.f32 %v219_v53 }
  0xfa   :  { %v1274_v54 = vpop.f32.mrf.mxu0 }
  0xfb   :  { %1428 = vtanh.f32 %v1274_v54 }
  0xfc   :  { %v1415_v56 = vpop.eup %1414  ;;  %v232_v57 = vpop.f32.mrf.mxu0 }
  0xfd   :  { %v1417_v58 = vpop.eup %1416  ;;  %v1167_v59 = vpack.c.bf16 %v1415_v56, %v1413_v55 }
  0xfe   :  { %v1419_v60 = vpop.eup %1418  ;;  %v1275_v61 = vpop.f32.mrf.mxu0  ;;  %v1381_v1 = vld [vmem:[#allocation2 + $0x8] sm:$0xff]  }
  0xff   :  { %1191 = vst [vmem:[#allocation2 + $0x18] sm:$0xff] %v1167_v59   ;;  %v1162_v62 = vpack.c.bf16 %v1419_v60, %v1417_v58  ;;  %1430 = vtanh.f32 %v1275_v61 }
 0x100   :  { %1432 = vtanh.f32 %v232_v57  ;;  %v235_v63 = vpop.f32.mrf.mxu0  ;;  %v1380_v0 = vld [vmem:[#allocation2] sm:$0xff]   ;;  %v1421_v2 = vpop.eup %1420 }
 0x101   :  { %1190 = vst [vmem:[#allocation2 + $0x10] sm:$0xff] %v1162_v62   ;;  %1434 = vtanh.f32 %v235_v63  ;;  %1292 = vmatprep.mubr.bf16.mxu1 %v1380_v0 }
 0x102   :  { %1293 = vmatmul.mubr.bf16.vlgmr.msra.gmra.mxu1 %v1381_v1 }
 0x103   :  { %1348 = vmatpush3.bf16.msra.mxu1 %v1584_v24 }
 0x104   :  { %v1423_v3 = vpop.eup %1422  ;;  %1341 = vmatprep.subr.bf16.mxu1 %v1592_v25 }
 0x105   :  { %v1425_v4 = vpop.eup %1424  ;;  %v1177_v5 = vpack.c.bf16 %v1423_v3, %v1421_v2 }
 0x106   :  { %v1427_v6 = vpop.eup %1426  ;;  %v1385_v9 = vld [vmem:[#allocation2 + $0x18] sm:$0xff]  }
 0x107   :  { %1193 = vst [vmem:[#allocation2 + $0x28] sm:$0xff] %v1177_v5   ;;  %v1172_v7 = vpack.c.bf16 %v1427_v6, %v1425_v4  ;;  %1349 = vmatpush3.bf16.msra.mxu1 %v1592_v25  ;;  %v1695_v5 = vpop.f32.mrf.mxu0 }
 0x108   :  { %v1384_v8 = vld [vmem:[#allocation2 + $0x10] sm:$0xff]   ;;  %1342 = vmatprep.subr.bf16.mxu1 %v1599_v26  ;;  %v1429_v10 = vpop.eup %1428 }
 0x109   :  { %1192 = vst [vmem:[#allocation2 + $0x20] sm:$0xff] %v1172_v7   ;;  %1296 = vmatprep.mubr.bf16.mxu1 %v1384_v8 }
 0x10a   :  { %1297 = vmatmul.mubr.bf16.gmra.mxu1 %v1385_v9 }
 0x10b   :  { %1350 = vmatpush3.bf16.msra.mxu1 %v1599_v26 }
 0x10c   :  { %v1431_v11 = vpop.eup %1430  ;;  %1343 = vmatprep.subr.bf16.mxu1 %v1606_v27 }
 0x10d   :  { %v1433_v12 = vpop.eup %1432  ;;  %v1187_v13 = vpack.c.bf16 %v1431_v11, %v1429_v10 }
 0x10e   :  { %v1435_v14 = vpop.eup %1434  ;;  %v1389_v17 = vld [vmem:[#allocation2 + $0x28] sm:$0xff]  }
 0x10f   :  { %1195 = vst [vmem:[#allocation2 + $0x38] sm:$0xff] %v1187_v13   ;;  %v1182_v15 = vpack.c.bf16 %v1435_v14, %v1433_v12  ;;  %1351 = vmatpush3.bf16.msra.mxu1 %v1606_v27 }
 0x110   :  { %v1388_v16 = vld [vmem:[#allocation2 + $0x20] sm:$0xff]   ;;  %1344 = vmatprep.subr.bf16.mxu1 %v1613_v28 }
 0x111   :  { %1194 = vst [vmem:[#allocation2 + $0x30] sm:$0xff] %v1182_v15   ;;  %1300 = vmatprep.mubr.bf16.mxu1 %v1388_v16  ;;  %v1701_v16 = vpop.f32.mrf.mxu0 }
 0x112   :  { %1301 = vmatmul.mubr.bf16.gmra.mxu1 %v1389_v17 }
 0x113   :  { %1352 = vmatpush3.bf16.msra.mxu1 %v1613_v28 }
 0x114   :  { %1345 = vmatprep.subr.bf16.mxu1 %v1619_v29 }
 0x116   :  { %v1393_v20 = vld [vmem:[#allocation2 + $0x38] sm:$0xff]  }
 0x117   :  { %1353 = vmatpush3.bf16.msra.mxu1 %v1619_v29 }
 0x118   :  { %v1392_v19 = vld [vmem:[#allocation2 + $0x30] sm:$0xff]   ;;  %1346 = vmatprep.subr.bf16.mxu1 %v1627_v30 }
 0x119   :  { %1304 = vmatprep.mubr.bf16.mxu1 %v1392_v19 }
 0x11a   :  { %1305 = vmatmul.mubr.bf16.gmra.mxu1 %v1393_v20 }
 0x11b   :  { %1354 = vmatpush3.bf16.msra.mxu1 %v1627_v30  ;;  %1332 = vmatprep.mubr.bf16.mxu1 %v1400_v18 }
 0x11c   :  { %1347 = vmatprep.subr.bf16.mxu1 %v1633_v31 }
 0x11f   :  { %1355 = vmatpush3.bf16.msra.mxu1 %v1633_v31 }
 0x122   :  { %1333 = vmatmul.mubr.bf16.vlgmr.msra.gmra.mxu1 %v1401_v21 }
 0x123   :  { %1336 = vmatprep.mubr.bf16.mxu1 %v1402_v22 }
 0x12a   :  { %1337 = vmatmul.mubr.bf16.gmra.mxu1 %v1403_v23 }
 0x1c2   :  { %v1294_v24 = vpop.f32.mrf.mxu1 }
 0x1c4   :  { %v505_v25 = vpop.f32.mrf.mxu1 }
 0x1c6   :  { %v1295_v26 = vpop.f32.mrf.mxu1 }
 0x1c7   :  { %v800_v27 = vmax.f32 %v1294_v24, %v1295_v26 }
 0x1c8   :  { %v508_v28 = vpop.f32.mrf.mxu1 }
 0x1c9   :  { %v801_v29 = vrot.slane %v800_v27, 4  ;;  %v793_v30 = vmax.f32 %v505_v25, %v508_v28 }
 0x1ca   :  { %v1298_v32 = vpop.f32.mrf.mxu1 }
 0x1cb   :  { %v802_v31 = vmax.f32 %v800_v27, %v801_v29  ;;  %v794_v33 = vrot.slane %v793_v30, 4 }
 0x1cc   :  { %v1677_v34 = vpop.f32.mrf.mxu1 }
 0x1cd   :  { %v803_v35 = vrot.slane %v802_v31, 2  ;;  %v795_v36 = vmax.f32 %v793_v30, %v794_v33  ;;  %v1713_v33 = vpop.f32.mrf.mxu0 }
 0x1ce   :  { %v1299_v37 = vpop.f32.mrf.mxu1 }
 0x1cf   :  { %v804_v38 = vmax.f32 %v802_v31, %v803_v35  ;;  %v796_v39 = vrot.slane %v795_v36, 2  ;;  %v814_v40 = vmax.f32 %v1298_v32, %v1299_v37 }
 0x1d0   :  { %v1679_v41 = vpop.f32.mrf.mxu1 }
 0x1d1   :  { %v805_v42 = vrot.slane %v804_v38, 1  ;;  %v797_v43 = vmax.f32 %v795_v36, %v796_v39  ;;  %v815_v44 = vrot.slane %v814_v40, 4  ;;  %v807_v45 = vmax.f32 %v1677_v34, %v1679_v41 }
 0x1d2   :  { %v1683_v46 = vpop.f32.mrf.mxu1 }
 0x1d3   :  { %v806_v47 = vmax.f32 %v804_v38, %v805_v42  ;;  %v798_v48 = vrot.slane %v797_v43, 1  ;;  %v816_v49 = vmax.f32 %v814_v40, %v815_v44  ;;  %v808_v50 = vrot.slane %v807_v45, 4 }
 0x1d4   :  { %v1685_v51 = vpop.f32.mrf.mxu1 }
 0x1d5   :  { %v851_v52 = vsub.f32 %v1294_v24, %v806_v47  ;;  %v852_v53 = vsub.f32 %v1295_v26, %v806_v47  ;;  %v799_v54 = vmax.f32 %v797_v43, %v798_v48  ;;  %v817_v55 = vrot.slane %v816_v49, 2  ;;  %v733_v43 = vpop.f32.mrf.mxu0 }
 0x1d6   :  { %v809_v56 = vmax.f32 %v807_v45, %v808_v50  ;;  %v1687_v57 = vpop.f32.mrf.mxu1 }
 0x1d7   :  { %v869_v58 = vmul.f32 1.442695, %v851_v52  ;;  %v871_v59 = vmul.f32 1.442695, %v852_v53  ;;  %v849_v60 = vsub.f32 %v505_v25, %v799_v54  ;;  %v850_v61 = vsub.f32 %v508_v28, %v799_v54 }
 0x1d8   :  { %v818_v62 = vmax.f32 %v816_v49, %v817_v55  ;;  %v810_v63 = vrot.slane %v809_v56, 2  ;;  %v828_v0 = vmax.f32 %v1683_v46, %v1687_v57  ;;  %v1691_v1 = vpop.f32.mrf.mxu1 }
 0x1d9   :  { %1436 = vpow2.f32 %v869_v58  ;;  %v865_v2 = vmul.f32 1.442695, %v849_v60  ;;  %v867_v3 = vmul.f32 1.442695, %v850_v61  ;;  %v821_v4 = vmax.f32 %v1685_v51, %v1691_v1 }
 0x1da   :  { %1438 = vpow2.f32 %v871_v59  ;;  %v819_v6 = vrot.slane %v818_v62, 1  ;;  %v811_v7 = vmax.f32 %v809_v56, %v810_v63  ;;  %v829_v8 = vrot.slane %v828_v0, 4  ;;  %v1697_v9 = vpop.f32.mrf.mxu1 }
 0x1db   :  { %1440 = vpow2.f32 %v865_v2  ;;  %v822_v10 = vrot.slane %v821_v4, 4 }
 0x1dc   :  { %1442 = vpow2.f32 %v867_v3  ;;  %v820_v11 = vmax.f32 %v818_v62, %v819_v6  ;;  %v812_v12 = vrot.slane %v811_v7, 1  ;;  %v830_v13 = vmax.f32 %v828_v0, %v829_v8  ;;  %v1699_v14 = vpop.f32.mrf.mxu1  ;;  %v1719_v62 = vpop.f32.mrf.mxu0 }
 0x1dd   :  { %v823_v15 = vmax.f32 %v821_v4, %v822_v10 }
 0x1de   :  { %v855_v17 = vsub.f32 %v1298_v32, %v820_v11  ;;  %v856_v18 = vsub.f32 %v1299_v37, %v820_v11  ;;  %v813_v19 = vmax.f32 %v811_v7, %v812_v12  ;;  %v831_v20 = vrot.slane %v830_v13, 2  ;;  %v1703_v21 = vpop.f32.mrf.mxu1  ;;  %v746_v6 = vpop.f32.mrf.mxu0 }
 0x1df   :  { %v824_v22 = vrot.slane %v823_v15, 2  ;;  %v842_v23 = vmax.f32 %v1697_v9, %v1703_v21 }
 0x1e0   :  { %v877_v24 = vmul.f32 1.442695, %v855_v17  ;;  %v879_v25 = vmul.f32 1.442695, %v856_v18  ;;  %v853_v26 = vsub.f32 %v1677_v34, %v813_v19  ;;  %v854_v27 = vsub.f32 %v1679_v41, %v813_v19  ;;  %v1709_v28 = vpop.f32.mrf.mxu1 }
 0x1e1   :  { %v832_v29 = vmax.f32 %v830_v13, %v831_v20  ;;  %v825_v30 = vmax.f32 %v823_v15, %v824_v22  ;;  %v843_v32 = vrot.slane %v842_v23, 4  ;;  %v835_v31 = vmax.f32 %v1699_v14, %v1709_v28 }
 0x1e2   :  { %1444 = vpow2.f32 %v877_v24  ;;  %v873_v35 = vmul.f32 1.442695, %v853_v26  ;;  %v875_v36 = vmul.f32 1.442695, %v854_v27 }
 0x1e3   :  { %1446 = vpow2.f32 %v879_v25  ;;  %v833_v37 = vrot.slane %v832_v29, 1  ;;  %v826_v38 = vrot.slane %v825_v30, 1  ;;  %v844_v39 = vmax.f32 %v842_v23, %v843_v32  ;;  %v1331_v25 = vpop.f32.mrf.mxu0 }
 0x1e4   :  { %1448 = vpow2.f32 %v873_v35  ;;  %v836_v34 = vrot.slane %v835_v31, 4 }
 0x1e5   :  { %1450 = vpow2.f32 %v875_v36  ;;  %v834_v40 = vmax.f32 %v832_v29, %v833_v37  ;;  %v827_v41 = vmax.f32 %v825_v30, %v826_v38  ;;  %v845_v42 = vrot.slane %v844_v39, 2  ;;  %v749_v38 = vpop.f32.mrf.mxu0 }
 0x1e6   :  { %v1437_v44 = vpop.eup %1436  ;;  %v837_v45 = vmax.f32 %v835_v31, %v836_v34 }
 0x1e7   :  { %v1439_v47 = vpop.eup %1438  ;;  %v859_v48 = vsub.f32 %v1683_v46, %v834_v40  ;;  %v860_v49 = vsub.f32 %v1687_v57, %v834_v40  ;;  %v857_v50 = vsub.f32 %v1685_v51, %v827_v41  ;;  %v858_v52 = vsub.f32 %v1691_v1, %v827_v41  ;;  %v1721_v57 = vpop.f32.mrf.mxu1 }
 0x1e8   :  { %v1441_v53 = vpop.eup %1440  ;;  %v976_v54 = vadd.f32 %v1439_v47, %v1437_v44  ;;  %v846_v55 = vmax.f32 %v844_v39, %v845_v42  ;;  %v838_v56 = vrot.slane %v837_v45, 2 }
 0x1e9   :  { %v1443_v58 = vpop.eup %1442  ;;  %v885_v59 = vmul.f32 1.442695, %v859_v48  ;;  %v887_v60 = vmul.f32 1.442695, %v860_v49  ;;  %v881_v61 = vmul.f32 1.442695, %v857_v50  ;;  %v762_v12 = vpop.f32.mrf.mxu1  ;;  %v897_v36 = vmul.f32 %v1441_v53, %v1701_v16 }
 0x1ea   :  { %v969_v63 = vadd.f32 %v1443_v58, %v1441_v53  ;;  %v883_v0 = vmul.f32 1.442695, %v858_v52  ;;  %v847_v2 = vrot.slane %v846_v55, 1  ;;  %v839_v46 = vmax.f32 %v837_v45, %v838_v56 }
 0x1eb   :  { %1452 = vpow2.f32 %v885_v59  ;;  %v977_v51 = vrot.slane %v976_v54, 4  ;;  %v1335_v32 = vpop.f32.mrf.mxu1 }
 0x1ec   :  { %v970_v3 = vrot.slane %v969_v63, 4  ;;  %1454 = vpow2.f32 %v887_v60  ;;  %v848_v1 = vmax.f32 %v846_v55, %v847_v2  ;;  %v840_v4 = vrot.slane %v839_v46, 1 }
 0x1ed   :  { %1456 = vpow2.f32 %v881_v61  ;;  %v978_v15 = vadd.f32 %v977_v51, %v976_v54  ;;  %v765_v40 = vpop.f32.mrf.mxu1 }
 0x1ee   :  { %1458 = vpow2.f32 %v883_v0  ;;  %v863_v7 = vsub.f32 %v1697_v9, %v848_v1  ;;  %v864_v10 = vsub.f32 %v1703_v21, %v848_v1  ;;  %v841_v11 = vmax.f32 %v839_v46, %v840_v4 }
 0x1ef   :  { %v1445_v8 = vpop.eup %1444  ;;  %v971_v17 = vadd.f32 %v970_v3, %v969_v63  ;;  %v899_v9 = vmul.f32 %v1437_v44, %v1695_v5  ;;  %v900_v21 = vmul.f32 %v1439_v47, %v1713_v33  ;;  %v979_v31 = vrot.slane %v978_v15, 2 }
 0x1f0   :  { %v1447_v13 = vpop.eup %1446  ;;  %v893_v18 = vmul.f32 1.442695, %v863_v7  ;;  %v895_v22 = vmul.f32 1.442695, %v864_v10  ;;  %v861_v23 = vsub.f32 %v1699_v14, %v841_v11  ;;  %v862_v24 = vsub.f32 %v1709_v28, %v841_v11 }
 0x1f1   :  { %v1449_v19 = vpop.eup %1448  ;;  %v990_v20 = vadd.f32 %v1447_v13, %v1445_v8  ;;  %v972_v37 = vrot.slane %v971_v17, 2  ;;  %v898_v28 = vmul.f32 %v1443_v58, %v733_v43  ;;  %v920_v5 = vadd.f32 %v900_v21, %v899_v9  ;;  %v1338_v58 = vpop.f32.mrf.mxu1 }
 0x1f2   :  { %v1451_v26 = vpop.eup %1450  ;;  %1460 = vpow2.f32 %v893_v18  ;;  %v889_v30 = vmul.f32 1.442695, %v861_v23  ;;  %v891_v35 = vmul.f32 1.442695, %v862_v24  ;;  %v980_v41 = vadd.f32 %v979_v31, %v978_v15 }
 0x1f3   :  { %v991_v27 = vrot.slane %v990_v20, 4  ;;  %v983_v29 = vadd.f32 %v1451_v26, %v1449_v19  ;;  %1462 = vpow2.f32 %v895_v22  ;;  %v901_v42 = vmul.f32 %v1449_v19, %v746_v6  ;;  %v778_v15 = vpop.f32.mrf.mxu1 }
 0x1f4   :  { %1464 = vpow2.f32 %v889_v30  ;;  %v902_v44 = vmul.f32 %v1451_v26, %v749_v38  ;;  %v973_v47 = vadd.f32 %v972_v37, %v971_v17  ;;  %v913_v49 = vadd.f32 %v898_v28, %v897_v36 }
 0x1f5   :  { %v984_v14 = vrot.slane %v983_v29, 4  ;;  %v992_v39 = vadd.f32 %v991_v27, %v990_v20  ;;  %1466 = vpow2.f32 %v891_v35  ;;  %v921_v43 = vrot.slane %v920_v5, 4  ;;  %v1339_v31 = vpop.f32.mrf.mxu1 }
 0x1f6   :  { %v903_v55 = vmul.f32 %v1445_v8, %v1719_v62  ;;  %v904_v56 = vmul.f32 %v1447_v13, %v1331_v25  ;;  %v981_v59 = vrot.slane %v980_v41, 1  ;;  %v927_v63 = vadd.f32 %v902_v44, %v901_v42 }
 0x1f7   :  { %v985_v34 = vadd.f32 %v984_v14, %v983_v29  ;;  %v993_v16 = vrot.slane %v992_v39, 2  ;;  %v974_v0 = vrot.slane %v973_v47, 1  ;;  %v914_v2 = vrot.slane %v913_v49, 4  ;;  %v781_v42 = vpop.f32.mrf.mxu1 }
 0x1f8   :  { %v1453_v33 = vpop.eup %1452  ;;  %v922_v7 = vadd.f32 %v921_v43, %v920_v5  ;;  %v934_v10 = vadd.f32 %v904_v56, %v903_v55  ;;  %v982_v62 = vadd.f32 %v981_v59, %v980_v41  ;;  %v928_v18 = vrot.slane %v927_v63, 4 }
 0x1f9   :  { %v1455_v45 = vpop.eup %1454  ;;  %v986_v48 = vrot.slane %v985_v34, 2  ;;  %v994_v51 = vadd.f32 %v993_v16, %v992_v39  ;;  %v975_v19 = vadd.f32 %v974_v0, %v973_v47  ;;  %v915_v22 = vadd.f32 %v914_v2, %v913_v49 }
 0x1fa   :  { %v1457_v50 = vpop.eup %1456  ;;  %v1004_v52 = vadd.f32 %v1455_v45, %v1453_v33  ;;  %v907_v26 = vmul.f32 %v1453_v33, %v1721_v57  ;;  %v908_v9 = vmul.f32 %v1455_v45, %v1335_v32  ;;  %v923_v29 = vrot.slane %v922_v7, 2 }
 0x1fb   :  { %v1459_v53 = vpop.eup %1458  ;;  %v987_v54 = vadd.f32 %v986_v48, %v985_v34  ;;  %v905_v46 = vmul.f32 %v1457_v50, %v762_v12  ;;  %v995_v12 = vrot.slane %v994_v51, 1  ;;  %v935_v30 = vrot.slane %v934_v10, 4 }
 0x1fc   :  { %v1005_v60 = vrot.slane %v1004_v52, 4  ;;  %v997_v61 = vadd.f32 %v1459_v53, %v1457_v50  ;;  %v906_v11 = vmul.f32 %v1459_v53, %v765_v40  ;;  %1468 = vrcp.f32 %v982_v62 }
 0x1fd   :  { %v988_v6 = vrot.slane %v987_v54, 1  ;;  %v929_v14 = vadd.f32 %v928_v18, %v927_v63  ;;  %v916_v39 = vrot.slane %v915_v22, 2  ;;  %1470 = vrcp.f32 %v975_v19 }
 0x1fe   :  { %v1006_v3 = vadd.f32 %v1005_v60, %v1004_v52  ;;  %v998_v1 = vrot.slane %v997_v61, 4  ;;  %v941_v23 = vadd.f32 %v906_v11, %v905_v46  ;;  %v996_v5 = vadd.f32 %v995_v12, %v994_v51 }
 0x1ff   :  { %v1461_v4 = vpop.eup %1460  ;;  %v989_v21 = vadd.f32 %v988_v6, %v987_v54  ;;  %v948_v41 = vadd.f32 %v908_v9, %v907_v26  ;;  %v936_v33 = vadd.f32 %v935_v30, %v934_v10  ;;  %v930_v47 = vrot.slane %v929_v14, 2 }
 0x200   :  { %v1463_v17 = vpop.eup %1462  ;;  %v1007_v8 = vrot.slane %v1006_v3, 2  ;;  %v999_v13 = vadd.f32 %v998_v1, %v997_v61  ;;  %v942_v34 = vrot.slane %v941_v23, 4  ;;  %v911_v48 = vmul.f32 %v1461_v4, %v1338_v58 }
 0x201   :  { %v1018_v20 = vadd.f32 %v1463_v17, %v1461_v4  ;;  %v1465_v24 = vpop.eup %1464  ;;  %1472 = vrcp.f32 %v989_v21  ;;  %v924_v53 = vadd.f32 %v923_v29, %v922_v7  ;;  %v949_v54 = vrot.slane %v948_v41, 4 }
 0x202   :  { %v1000_v25 = vrot.slane %v999_v13, 2  ;;  %v1467_v35 = vpop.eup %1466  ;;  %v1008_v36 = vadd.f32 %v1007_v8, %v1006_v3  ;;  %v943_v16 = vadd.f32 %v942_v34, %v941_v23  ;;  %v909_v52 = vmul.f32 %v1465_v24, %v778_v15 }
 0x203   :  { %v1019_v27 = vrot.slane %v1018_v20, 4  ;;  %v1011_v38 = vadd.f32 %v1467_v35, %v1465_v24  ;;  %v912_v43 = vmul.f32 %v1463_v17, %v1339_v31  ;;  %v910_v55 = vmul.f32 %v1467_v35, %v781_v42 }
 0x204   :  { %v1001_v37 = vadd.f32 %v1000_v25, %v999_v13  ;;  %v1009_v44 = vrot.slane %v1008_v36, 1  ;;  %v917_v60 = vadd.f32 %v916_v39, %v915_v22  ;;  %v937_v46 = vrot.slane %v936_v33, 2 }
 0x205   :  { %v1020_v28 = vadd.f32 %v1019_v27, %v1018_v20  ;;  %v1012_v32 = vrot.slane %v1011_v38, 4  ;;  %v962_v63 = vadd.f32 %v912_v43, %v911_v48  ;;  %v955_v0 = vadd.f32 %v910_v55, %v909_v52 }
 0x206   :  { %v1002_v40 = vrot.slane %v1001_v37, 1  ;;  %v1010_v61 = vadd.f32 %v1009_v44, %v1008_v36  ;;  %v931_v51 = vadd.f32 %v930_v47, %v929_v14  ;;  %v944_v58 = vrot.slane %v943_v16, 2 }
 0x207   :  { %v1021_v57 = vrot.slane %v1020_v28, 2  ;;  %v1013_v50 = vadd.f32 %v1012_v32, %v1011_v38  ;;  %v950_v1 = vadd.f32 %v949_v54, %v948_v41  ;;  %v963_v4 = vrot.slane %v962_v63, 4 }
 0x208   :  { %v1003_v45 = vadd.f32 %v1002_v40, %v1001_v37  ;;  %v956_v6 = vrot.slane %v955_v0, 4  ;;  %v918_v10 = vrot.slane %v917_v60, 1  ;;  %v932_v8 = vrot.slane %v931_v51, 1 }
 0x209   :  { %v1022_v49 = vadd.f32 %v1021_v57, %v1020_v28  ;;  %v1014_v59 = vrot.slane %v1013_v50, 2  ;;  %v964_v11 = vadd.f32 %v963_v4, %v962_v63  ;;  %v1469_v17 = vpop.eup %1468  ;;  %v945_v13 = vadd.f32 %v944_v58, %v943_v16 }
 0x20a   :  { %1474 = vrcp.f32 %v1003_v45  ;;  %v957_v15 = vadd.f32 %v956_v6, %v955_v0  ;;  %v925_v18 = vrot.slane %v924_v53, 1  ;;  %v938_v19 = vadd.f32 %v937_v46, %v936_v33  ;;  %v1471_v22 = vpop.eup %1470 }
 0x20b   :  { %v1023_v56 = vrot.slane %v1022_v49, 1  ;;  %1476 = vrcp.f32 %v996_v5  ;;  %v1015_v2 = vadd.f32 %v1014_v59, %v1013_v50  ;;  %v951_v20 = vrot.slane %v950_v1, 2 }
 0x20c   :  { %1478 = vrcp.f32 %v1010_v61  ;;  %v958_v23 = vrot.slane %v957_v15, 2  ;;  %v919_v12 = vadd.f32 %v918_v10, %v917_v60  ;;  %v965_v25 = vrot.slane %v964_v11, 2 }
 0x20d   :  { %v1024_v3 = vadd.f32 %v1023_v56, %v1022_v49  ;;  %v1016_v7 = vrot.slane %v1015_v2, 1  ;;  %v933_v26 = vadd.f32 %v932_v8, %v931_v51  ;;  %v946_v9 = vrot.slane %v945_v13, 1 }
 0x20e   :  { %v1473_v24 = vpop.eup %1472  ;;  %v926_v21 = vadd.f32 %v925_v18, %v924_v53  ;;  %v1033_v27 = vmul.f32 %v1471_v22, %v919_v12  ;;  %v939_v29 = vrot.slane %v938_v19, 1  ;;  %v952_v30 = vadd.f32 %v951_v20, %v950_v1 }
 0x20f   :  { %v1017_v62 = vadd.f32 %v1016_v7, %v1015_v2  ;;  %1480 = vrcp.f32 %v1024_v3  ;;  %v1035_v31 = vmul.f32 %v1473_v24, %v933_v26  ;;  %v959_v35 = vadd.f32 %v958_v23, %v957_v15 }
 0x210   :  { %v1034_v37 = vmul.f32 %v1469_v17, %v926_v21  ;;  %v966_v14 = vadd.f32 %v965_v25, %v964_v11  ;;  %v947_v38 = vadd.f32 %v946_v9, %v945_v13  ;;  %v940_v34 = vadd.f32 %v939_v29, %v938_v19 }
 0x211   :  { %1482 = vrcp.f32 %v1017_v62  ;;  %v953_v5 = vrot.slane %v952_v30, 1  ;;  %v960_v57 = vrot.slane %v959_v35, 1 }
 0x212   :  { %v1050_v39 = vsel %vm1049_vm0, %v1034_v37, %v1033_v27  ;;  %v967_v33 = vrot.slane %v966_v14, 1 }
 0x213   :  { %v1052_v40 = vsel %vm1051_vm1, %v1035_v31, %v1050_v39  ;;  %v954_v44 = vadd.f32 %v953_v5, %v952_v30  ;;  %v961_v49 = vadd.f32 %v960_v57, %v959_v35 }
 0x214   :  { %v968_v52 = vadd.f32 %v967_v33, %v966_v14 }
 0x217   :  { %v1475_v36 = vpop.eup %1474 }
 0x218   :  { %v1477_v28 = vpop.eup %1476  ;;  %v1037_v41 = vmul.f32 %v1475_v36, %v947_v38 }
 0x219   :  { %v1036_v32 = vmul.f32 %v1477_v28, %v940_v34  ;;  %v1479_v42 = vpop.eup %1478 }
 0x21a   :  { %v1038_v16 = vmul.f32 %v1479_v42, %v954_v44 }
 0x21b   :  { %v1054_v45 = vsel %vm1053_vm2, %v1036_v32, %v1052_v40 }
 0x21c   :  { %v1481_v47 = vpop.eup %1480  ;;  %v1056_v48 = vsel %vm1055_vm3, %v1037_v41, %v1054_v45 }
 0x21d   :  { %v1040_v54 = vmul.f32 %v1481_v47, %v968_v52  ;;  %v1058_v43 = vsel %vm1057_vm4, %v1038_v16, %v1056_v48 }
 0x21e   :  { %v1483_v50 = vpop.eup %1482 }
 0x21f   :  { %v1039_v53 = vmul.f32 %v1483_v50, %v961_v49 }
 0x221   :  { %v1060_v55 = vsel %vm1059_vm5, %v1039_v53, %v1058_v43 }
 0x222   :  { %v1062_v56 = vsel %vm1061_vm6, %v1040_v54, %v1060_v55 }
 0x223   :  { %1064 = vst [vmem:[%s1739_s4] sm:$0xff] %v1062_v56 }

</bundles_post_ra>
